<compile_context>
chip_gen: v7x
topology: tpu7x:2x2x1
jax: 0.10.0
libtpu: 0.0.40
codegen_flags: <defaults>
</compile_context>

<pallas_src>
import jax
import jax.numpy as jnp
from jax.experimental import pallas as pl
from jax.experimental.pallas import tpu as pltpu


def _mlp_softmax_kernel(x_ref, w1_ref, b1_ref, w2_ref, b2_ref, o_ref):
    # fc1 on the MXU: bf16 inputs, f32 accumulation.
    h = jnp.dot(x_ref[...], w1_ref[...], preferred_element_type=jnp.float32)
    # Bias + ReLU in f32 on the VPU.
    h = jnp.maximum(h + b1_ref[...], 0.0)
    # fc2 on the MXU: re-cast activations to the weight dtype, f32 accumulation.
    logits = jnp.dot(h.astype(w2_ref.dtype), w2_ref[...],
                     preferred_element_type=jnp.float32)
    logits = logits + b2_ref[...]
    # Numerically stable softmax over the last dim, all in f32.
    m = jnp.max(logits, axis=-1, keepdims=True)
    e = jnp.exp(logits - m)
    denom = jnp.sum(e, axis=-1, keepdims=True)
    # Reciprocal on the EUP (approx) instead of a VALU divide.
    o_ref[...] = (e * pl.reciprocal(denom, approx=True)).astype(o_ref.dtype)


def _round_up(n, m):
    return ((n + m - 1) // m) * m


def auto_reply_classifier(x, w1, b1, w2, b2, *, tile_b=512,
                          compute_dtype=jnp.bfloat16):
    """Forward pass of AutoReplyClassifier.

    x:  (B, input_size)            float32
    w1: (input_size, hidden_size)  fc1 weight (pre-transposed)
    b1: (hidden_size,)             fc1 bias
    w2: (hidden_size, output_size) fc2 weight (pre-transposed)
    b2: (output_size,)             fc2 bias
    Returns (B, output_size) float32 softmax probabilities.
    """
    B, in_dim = x.shape
    hid = w1.shape[1]
    out = w2.shape[1]

    # Sublane granularity of the batch tile (16 for 2-byte compute dtypes).
    sub = 16 if jnp.dtype(compute_dtype).itemsize == 2 else 8
    tile_b = _round_up(min(tile_b, _round_up(B, sub)), sub)
    b_pad = _round_up(B, tile_b)
    num_tiles = b_pad // tile_b

    if b_pad != B:
        x = jnp.pad(x, ((0, b_pad - B), (0, 0)))  # zero rows; sliced off below

    xc = x.astype(compute_dtype)
    w1c = w1.astype(compute_dtype)
    w2c = w2.astype(compute_dtype)
    b1_2d = b1.reshape(1, hid).astype(jnp.float32)
    b2_2d = b2.reshape(1, out).astype(jnp.float32)

    out_padded = pl.pallas_call(
        _mlp_softmax_kernel,
        out_shape=jax.ShapeDtypeStruct((b_pad, out), jnp.float32),
        grid_spec=pltpu.PrefetchScalarGridSpec(
            num_scalar_prefetch=0,
            grid=(num_tiles,),
            in_specs=[
                pl.BlockSpec((tile_b, in_dim), lambda i: (i, 0)),  # x (streamed)
                pl.BlockSpec((in_dim, hid),    lambda i: (0, 0)),  # w1 (resident)
                pl.BlockSpec((1, hid),         lambda i: (0, 0)),  # b1 (resident)
                pl.BlockSpec((hid, out),       lambda i: (0, 0)),  # w2 (resident)
                pl.BlockSpec((1, out),         lambda i: (0, 0)),  # b2 (resident)
            ],
            out_specs=pl.BlockSpec((tile_b, out), lambda i: (i, 0)),
        ),
        compiler_params=pltpu.CompilerParams(
            dimension_semantics=("parallel",)),  # megacore shards batch tiles
    )(xc, w1c, b1_2d, w2c, b2_2d)

    return out_padded[:B] if b_pad != B else out_padded


def _reference(x, w1, b1, w2, b2):
    h = jnp.maximum(x @ w1 + b1, 0.0)
    logits = h @ w2 + b2
    return jax.nn.softmax(logits, axis=-1)


if __name__ == "__main__":
    # Small shapes consistent with the module:
    #   input_size=len(vocab) -> 32, hidden_size -> 128 (scaled from 4096),
    #   output_size=len(label_mapping) -> 16, batch=24 (exercises padding).
    B, input_size, hidden_size, output_size = 24, 32, 128, 16

    key = jax.random.PRNGKey(0)
    kx, kw1, kb1, kw2, kb2 = jax.random.split(key, 5)

    x = jax.random.normal(kx, (B, input_size), dtype=jnp.float32)
    # Deterministic synthetic parameters (mimics nn.Linear init scale).
    w1 = jax.random.uniform(kw1, (input_size, hidden_size), jnp.float32,
                            minval=-1.0, maxval=1.0) / jnp.sqrt(input_size)
    b1 = jax.random.uniform(kb1, (hidden_size,), jnp.float32,
                            minval=-1.0, maxval=1.0) / jnp.sqrt(input_size)
    w2 = jax.random.uniform(kw2, (hidden_size, output_size), jnp.float32,
                            minval=-1.0, maxval=1.0) / jnp.sqrt(hidden_size)
    b2 = jax.random.uniform(kb2, (output_size,), jnp.float32,
                            minval=-1.0, maxval=1.0) / jnp.sqrt(hidden_size)

    ref = _reference(x, w1, b1, w2, b2)

    # Default path: one large tile covering the (padded) batch.
    out = jax.block_until_ready(auto_reply_classifier(x, w1, b1, w2, b2))
    assert out.shape == (B, output_size)
    assert jnp.allclose(out, ref, atol=1e-2, rtol=1e-2), "mismatch vs reference"
    assert jnp.allclose(jnp.sum(out, axis=-1), 1.0, atol=5e-3), \
        "softmax rows must sum to 1"

    # Multi-tile + padding path: 24 rows -> 2 tiles of 16 (8 padded rows).
    out2 = jax.block_until_ready(
        auto_reply_classifier(x, w1, b1, w2, b2, tile_b=16))
    assert out2.shape == (B, output_size)
    assert jnp.allclose(out2, ref, atol=1e-2, rtol=1e-2), "mismatch (tiled path)"

    print("KERNEL_OK")
</pallas_src>

<mosaic_0001>
module attributes {stable_mosaic.version = 11 : i64} {
  func.func @_mlp_softmax_kernel(%arg0: i32, %arg1: memref<32x32xbf16, #tpu.memory_space<vmem>>, %arg2: memref<32x128xbf16, #tpu.memory_space<vmem>>, %arg3: memref<1x128xf32, #tpu.memory_space<vmem>>, %arg4: memref<128x16xbf16, #tpu.memory_space<vmem>>, %arg5: memref<1x16xf32, #tpu.memory_space<vmem>>, %arg6: memref<32x16xf32, #tpu.memory_space<vmem>>) attributes {dimension_semantics = [#tpu.dimension_semantics<parallel>], iteration_bounds = array<i64: 1>, scalar_prefetch = 0 : i64, scratch_operands = 0 : i64, tpu.core_type = #tpu.core_type<tc>, window_params = [{transform_indices = @transform_0, window_bounds = array<i64: 32, 32>}, {pipeline_mode = #tpu.pipeline_mode<synchronous>, transform_indices = @transform_1, window_bounds = array<i64: 32, 128>}, {pipeline_mode = #tpu.pipeline_mode<synchronous>, transform_indices = @transform_2, window_bounds = array<i64: 1, 128>}, {pipeline_mode = #tpu.pipeline_mode<synchronous>, transform_indices = @transform_3, window_bounds = array<i64: 128, 16>}, {pipeline_mode = #tpu.pipeline_mode<synchronous>, transform_indices = @transform_4, window_bounds = array<i64: 1, 16>}, {transform_indices = @transform_5, window_bounds = array<i64: 32, 16>}]} {
    %c0 = arith.constant 0 : index
    %c0_0 = arith.constant 0 : index
    %0 = vector.load %arg1[%c0, %c0_0] : memref<32x32xbf16, #tpu.memory_space<vmem>>, vector<32x32xbf16>
    %c0_1 = arith.constant 0 : index
    %c0_2 = arith.constant 0 : index
    %1 = vector.load %arg2[%c0_1, %c0_2] : memref<32x128xbf16, #tpu.memory_space<vmem>>, vector<32x128xbf16>
    %cst = arith.constant dense<0.000000e+00> : vector<32x128xf32>
    %2 = tpu.matmul %0, %1, %cst {dimension_numbers = #tpu.dot_dimension_numbers<[1], [0], [0], [1], [0, 0, 1, 1], [], []>} : vector<32x32xbf16>, vector<32x128xbf16>, vector<32x128xf32> -> vector<32x128xf32>
    %c0_3 = arith.constant 0 : index
    %c0_4 = arith.constant 0 : index
    %3 = vector.load %arg3[%c0_3, %c0_4] : memref<1x128xf32, #tpu.memory_space<vmem>>, vector<1x128xf32>
    %4 = vector.broadcast %3 : vector<1x128xf32> to vector<32x128xf32>
    %5 = arith.addf %2, %4 : vector<32x128xf32>
    %cst_5 = arith.constant 0.000000e+00 : f32
    %6 = vector.broadcast %cst_5 : f32 to vector<32x128xf32>
    %7 = arith.maximumf %5, %6 : vector<32x128xf32>
    %8 = arith.truncf %7 : vector<32x128xf32> to vector<32x128xbf16>
    %c0_6 = arith.constant 0 : index
    %c0_7 = arith.constant 0 : index
    %9 = vector.load %arg4[%c0_6, %c0_7] : memref<128x16xbf16, #tpu.memory_space<vmem>>, vector<128x16xbf16>
    %cst_8 = arith.constant dense<0.000000e+00> : vector<32x16xf32>
    %10 = tpu.matmul %8, %9, %cst_8 {dimension_numbers = #tpu.dot_dimension_numbers<[1], [0], [0], [1], [0, 0, 1, 1], [], []>} : vector<32x128xbf16>, vector<128x16xbf16>, vector<32x16xf32> -> vector<32x16xf32>
    %c0_9 = arith.constant 0 : index
    %c0_10 = arith.constant 0 : index
    %11 = vector.load %arg5[%c0_9, %c0_10] : memref<1x16xf32, #tpu.memory_space<vmem>>, vector<1x16xf32>
    %12 = vector.broadcast %11 : vector<1x16xf32> to vector<32x16xf32>
    %13 = arith.addf %10, %12 : vector<32x16xf32>
    %cst_11 = arith.constant dense<0xFF800000> : vector<32xf32>
    %14 = vector.multi_reduction <maximumf>, %13, %cst_11 [1] : vector<32x16xf32> to vector<32xf32>
    %15 = vector.shape_cast %14 : vector<32xf32> to vector<32x1xf32>
    %16 = vector.broadcast %15 : vector<32x1xf32> to vector<32x16xf32>
    %17 = arith.subf %13, %16 : vector<32x16xf32>
    %18 = math.exp %17 : vector<32x16xf32>
    %cst_12 = arith.constant dense<0.000000e+00> : vector<32xf32>
    %19 = vector.multi_reduction <add>, %18, %cst_12 [1] : vector<32x16xf32> to vector<32xf32>
    %20 = vector.shape_cast %19 : vector<32xf32> to vector<32x1xf32>
    %21 = tpu.reciprocal %20 {approx = true} : vector<32x1xf32> -> vector<32x1xf32>
    %22 = vector.broadcast %21 : vector<32x1xf32> to vector<32x16xf32>
    %23 = arith.mulf %18, %22 : vector<32x16xf32>
    %c0_13 = arith.constant 0 : index
    %c0_14 = arith.constant 0 : index
    %24 = vector.load %arg6[%c0_13, %c0_14] : memref<32x16xf32, #tpu.memory_space<vmem>>, vector<32x16xf32>
    tpu.vector_store %arg6[%c0_13, %c0_14], %23 {strides = array<i32>} : memref<32x16xf32, #tpu.memory_space<vmem>>, vector<32x16xf32>,
    return
  }
  func.func @transform_0(%arg0: i32) -> (i32, i32) {
    %c0_i32 = arith.constant 0 : i32
    %c0_i32_0 = arith.constant 0 : i32
    return %arg0, %c0_i32 : i32, i32
  }
  func.func @transform_1(%arg0: i32) -> (i32, i32) {
    %c0_i32 = arith.constant 0 : i32
    %c0_i32_0 = arith.constant 0 : i32
    %c0_i32_1 = arith.constant 0 : i32
    return %c0_i32, %c0_i32_0 : i32, i32
  }
  func.func @transform_2(%arg0: i32) -> (i32, i32) {
    %c0_i32 = arith.constant 0 : i32
    %c0_i32_0 = arith.constant 0 : i32
    %c0_i32_1 = arith.constant 0 : i32
    return %c0_i32, %c0_i32_0 : i32, i32
  }
  func.func @transform_3(%arg0: i32) -> (i32, i32) {
    %c0_i32 = arith.constant 0 : i32
    %c0_i32_0 = arith.constant 0 : i32
    %c0_i32_1 = arith.constant 0 : i32
    return %c0_i32, %c0_i32_0 : i32, i32
  }
  func.func @transform_4(%arg0: i32) -> (i32, i32) {
    %c0_i32 = arith.constant 0 : i32
    %c0_i32_0 = arith.constant 0 : i32
    %c0_i32_1 = arith.constant 0 : i32
    return %c0_i32, %c0_i32_0 : i32, i32
  }
  func.func @transform_5(%arg0: i32) -> (i32, i32) {
    %c0_i32 = arith.constant 0 : i32
    %c0_i32_0 = arith.constant 0 : i32
    return %arg0, %c0_i32 : i32, i32
  }
}

</mosaic_0001>

<bundles_post_ra>
// kernel: tpu_custom_call.1
= control target key start
LH: loop header
LB: loop body
LE: loop exit
PB: predicated region body
PF: predicated region fallthrough
CT: control target
= control target key end

     0   :  { %vm58_vm0 = vcmask 261120   ;;  %vm240_vm1 = vcmask 130048   ;;  %s475_s1 = inlined_call_operand.vmem [shape: bf16[32,128], index: 1, kind: input, shape index: {}]   ;;  %s476_s0 = inlined_call_operand.vmem [shape: bf16[32,32], index: 0, kind: input, shape index: {}]   ;;  %s477_s3 = inlined_call_operand.vmem [shape: bf16[128,16], index: 3, kind: input, shape index: {}]   ;;  %s478_s2 = inlined_call_operand.vmem [shape: f32[1,128], index: 2, kind: input, shape index: {}]   ;;  %s479_s4 = inlined_call_operand.vmem [shape: f32[1,16], index: 4, kind: input, shape index: {}]   ;;  %s480_s5 = inlined_call_operand.vmem [shape: f32[32,16], index: 5, kind: output, shape index: {}]  }
   0x1   :  { %v351_v0 = vld [vmem:[%s475_s1] sm:$0xff]   ;;  %v352_v1 = vld [vmem:[%s475_s1 + $0x8] sm:$0xff]   ;;  %v357_v6 = vld [vmem:[%s477_s3 + $0x10] sm:$0xff]  }
   0x2   :  { %323 = vmatprep.subr.bf16.mxu0 %v351_v0  ;;  %v353_v2 = vld [vmem:[%s476_s0] sm:$0xff]   ;;  %v356_v4 = vld [vmem:[%s477_s3 + $0x8] sm:$0xff]   ;;  %v358_v7 = vld [vmem:[%s477_s3 + $0x18] sm:$0xff]  }
   0x3   :  { %324 = vmatpush3.bf16.msra.mxu0 %v351_v0  ;;  %327 = vmatprep.mubr.msk.bf16.mxu0 %vm58_vm0, %v353_v2  ;;  %v355_v3 = vld [vmem:[%s477_s3] sm:$0xff]   ;;  %v354_v5 = vld [vmem:[%s476_s0 + $0x8] sm:$0xff]   ;;  %v361_v10 = vld [vmem:[%s477_s3 + $0x30] sm:$0xff]  }
   0x4   :  { %325 = vmatprep.subr.bf16.mxu0 %v352_v1  ;;  %331 = vmatprep.subr.bf16.mxu1 %v355_v3  ;;  %v359_v8 = vld [vmem:[%s477_s3 + $0x20] sm:$0xff]   ;;  %v360_v9 = vld [vmem:[%s477_s3 + $0x28] sm:$0xff]   ;;  %v362_v11 = vld [vmem:[%s477_s3 + $0x38] sm:$0xff]  }
   0x5   :  { %332 = vmatpush3.bf16.msra.mxu1 %v355_v3  ;;  %v293_v12 = vld [vmem:[%s478_s2] ss:$0 sm:$0xff] }
   0x6   :  { %333 = vmatprep.subr.bf16.mxu1 %v356_v4  ;;  %v300_v27 = vld [vmem:[%s479_s4] ss:$0 sm:$0xff] }
   0x7   :  { %326 = vmatpush3.bf16.msra.mxu0 %v352_v1 }
   0x9   :  { %334 = vmatpush3.bf16.msra.mxu1 %v356_v4 }
   0xa   :  { %328 = vmatmul.mubr.msk.bf16.vlgmr.msra.gmra.mrb[0].mxu0 %vm58_vm0, %v354_v5  ;;  %335 = vmatprep.subr.bf16.mxu1 %v357_v6 }
   0xd   :  { %336 = vmatpush3.bf16.msra.mxu1 %v357_v6 }
   0xe   :  { %337 = vmatprep.subr.bf16.mxu1 %v358_v7 }
  0x11   :  { %338 = vmatpush3.bf16.msra.mxu1 %v358_v7 }
  0x12   :  { %339 = vmatprep.subr.bf16.mxu1 %v359_v8 }
  0x15   :  { %340 = vmatpush3.bf16.msra.mxu1 %v359_v8 }
  0x16   :  { %341 = vmatprep.subr.bf16.mxu1 %v360_v9 }
  0x19   :  { %342 = vmatpush3.bf16.msra.mxu1 %v360_v9 }
  0x1a   :  { %343 = vmatprep.subr.bf16.mxu1 %v361_v10 }
  0x1d   :  { %344 = vmatpush3.bf16.msra.mxu1 %v361_v10 }
  0x1e   :  { %345 = vmatprep.subr.bf16.mxu1 %v362_v11 }
  0x21   :  { %346 = vmatpush3.bf16.msra.mxu1 %v362_v11 }
  0xdd   :  { %v329_v13 = vpop.f32.mrb[0].mxu0 }
  0xde   :  { %v108_v14 = vadd.f32 %v329_v13, %v293_v12  ;;  %v99_v15 = vpop.f32.mrb[1].mxu0 }
  0xdf   :  { %v100_v16 = vadd.f32 %v293_v12, %v99_v15  ;;  %v330_v17 = vpop.f32.mrb[2].mxu0 }
  0xe0   :  { %v111_v18 = vadd.f32 %v330_v17, %v293_v12  ;;  %v102_v19 = vpop.f32.mrb[3].mxu0  ;;  %v116_v21 = vmax.f32 %v108_v14, 0.0 }
  0xe1   :  { %v103_v20 = vadd.f32 %v293_v12, %v102_v19  ;;  %v114_v23 = vmax.f32 %v100_v16, 0.0 }
  0xe2   :  { %v117_v22 = vmax.f32 %v111_v18, 0.0 }
  0xe3   :  { %v115_v24 = vmax.f32 %v103_v20, 0.0 }
  0xe4   :  { %v119_v25 = vpack.c.bf16 %v117_v22, %v116_v21 }
  0xe5   :  { %v118_v26 = vpack.c.bf16 %v115_v24, %v114_v23 }
  0xe7   :  { %347 = vmatprep.mubr.bf16.mxu1 %v118_v26 }
  0xe8   :  { %348 = vmatmul.mubr.bf16.vlgmr.msra.gmra.mrb[0].mxu1 %v119_v25 }
 0x1bb   :  { %v349_v28 = vpop.f32.mrb[0].mxu1 }
 0x1bc   :  { %v234_v29 = vadd.f32 %v349_v28, %v300_v27  ;;  %v225_v30 = vpop.f32.mrb[1].mxu1 }
 0x1bd   :  { %v226_v31 = vadd.f32 %v300_v27, %v225_v30  ;;  %v350_v32 = vpop.f32.mrb[2].mxu1 }
 0x1be   :  { %v237_v33 = vadd.f32 %v350_v32, %v300_v27  ;;  %v228_v34 = vpop.f32.mrb[3].mxu1  ;;  %v247_v35 = vsel %vm240_vm1, %v234_v29, -inf }
 0x1bf   :  { %v229_v36 = vadd.f32 %v300_v27, %v228_v34  ;;  %248 = vmax.xlane.f32.xlu1 %v247_v35  ;;  %v241_v37 = vsel %vm240_vm1, %v226_v31, -inf }
 0x1c0   :  { %242 = vmax.xlane.f32.xlu0 %v241_v37  ;;  %v250_v38 = vsel %vm240_vm1, %v237_v33, -inf }
 0x1c1   :  { %v244_v39 = vsel %vm240_vm1, %v229_v36, -inf }
 0x1c3   :  { %251 = vmax.xlane.f32.xlu1 %v250_v38 }
 0x1c4   :  { %245 = vmax.xlane.f32.xlu0 %v244_v39 }
 0x24c   :  { %v249_v40 = vpop.xlane.xlu1 %248 }
 0x24d   :  { %v255_v41 = vsub.f32 %v234_v29, %v249_v40  ;;  %v243_v42 = vpop.xlane.xlu0 %242 }
 0x24e   :  { %v253_v43 = vsub.f32 %v226_v31, %v243_v42 }
 0x24f   :  { %v261_v44 = vmul.f32 1.442695, %v255_v41 }
 0x250   :  { %v257_v45 = vmul.f32 1.442695, %v253_v43  ;;  %v252_v46 = vpop.xlane.xlu1 %251 }
 0x251   :  { %v256_v47 = vsub.f32 %v237_v33, %v252_v46  ;;  %v246_v48 = vpop.xlane.xlu0 %245 }
 0x252   :  { %363 = vpow2.f32 %v257_v45  ;;  %v254_v49 = vsub.f32 %v229_v36, %v246_v48 }
 0x253   :  { %365 = vpow2.f32 %v261_v44  ;;  %v263_v50 = vmul.f32 1.442695, %v256_v47 }
 0x254   :  { %v259_v51 = vmul.f32 1.442695, %v254_v49 }
 0x256   :  { %367 = vpow2.f32 %v259_v51 }
 0x257   :  { %369 = vpow2.f32 %v263_v50 }
 0x25c   :  { %v364_v52 = vpop.eup %363 }
 0x25d   :  { %v265_v53 = vsel %vm240_vm1, %v364_v52, 0.0  ;;  %v366_v54 = vpop.eup %365 }
 0x25e   :  { %266 = vadd.xlane.f32.xlu0 %v265_v53  ;;  %v271_v56 = vsel %vm240_vm1, %v366_v54, 0.0 }
 0x260   :  { %v368_v55 = vpop.eup %367 }
 0x261   :  { %v268_v57 = vsel %vm240_vm1, %v368_v55, 0.0  ;;  %v370_v58 = vpop.eup %369 }
 0x262   :  { %272 = vadd.xlane.f32.xlu0 %v271_v56  ;;  %269 = vadd.xlane.f32.xlu1 %v268_v57  ;;  %v274_v59 = vsel %vm240_vm1, %v370_v58, 0.0 }
 0x266   :  { %275 = vadd.xlane.f32.xlu1 %v274_v59 }
 0x2eb   :  { %v267_v60 = vpop.xlane.xlu0 %266 }
 0x2ec   :  { %371 = vrcp.f32 %v267_v60 }
 0x2ef   :  { %v270_v61 = vpop.xlane.xlu1 %269  ;;  %v273_v62 = vpop.xlane.xlu0 %272 }
 0x2f0   :  { %373 = vrcp.f32 %v270_v61 }
 0x2f1   :  { %375 = vrcp.f32 %v273_v62 }
 0x2f3   :  { %v276_v63 = vpop.xlane.xlu1 %275 }
 0x2f4   :  { %377 = vrcp.f32 %v276_v63 }
 0x2f6   :  { %v372_v0 = vpop.eup %371 }
 0x2f7   :  { %v281_v1 = vmul.f32 %v372_v0, %v364_v52 }
 0x2f9   :  { %285 = vst.msk [vmem:[%s480_s5] sm:$0xff] %vm240_vm1, %v281_v1 }
 0x2fa   :  { %v374_v2 = vpop.eup %373 }
 0x2fb   :  { %v376_v3 = vpop.eup %375  ;;  %v282_v4 = vmul.f32 %v374_v2, %v368_v55 }
 0x2fc   :  { %v283_v5 = vmul.f32 %v376_v3, %v366_v54 }
 0x2fd   :  { %286 = vst.msk [vmem:[%s480_s5 + $0x8] sm:$0xff] %vm240_vm1, %v282_v4 }
 0x2fe   :  { %v378_v6 = vpop.eup %377  ;;  %287 = vst.msk [vmem:[%s480_s5 + $0x10] sm:$0xff] %vm240_vm1, %v283_v5 }
 0x2ff   :  { %v284_v7 = vmul.f32 %v378_v6, %v370_v58 }
 0x301   :  { %288 = vst.msk [vmem:[%s480_s5 + $0x18] sm:$0xff] %vm240_vm1, %v284_v7 }

</bundles_post_ra>
